<compile_context>
chip_gen: v7x
topology: tpu7x:2x2x1
jax: 0.10.0
libtpu: 0.0.40
codegen_flags: <defaults>
</compile_context>

<pallas_src>
import functools

import numpy as np
import jax
import jax.numpy as jnp
from jax.experimental import pallas as pl
from jax.experimental.pallas import tpu as pltpu


# ----------------------------------------------------------------------------
# Host-side parameter init (torch.nn.Linear-style uniform) + slab packing
# ----------------------------------------------------------------------------
def _init_linear(key, din, dout):
    kw, kb = jax.random.split(key)
    bound = 1.0 / float(np.sqrt(din))
    w = np.asarray(jax.random.uniform(kw, (din, dout), jnp.float32, -bound, bound))
    b = np.asarray(jax.random.uniform(kb, (dout,), jnp.float32, -bound, bound))
    return w, b


def _init_mlp(key, sizes):
    keys = jax.random.split(key, len(sizes) - 1)
    return [_init_linear(k, i, o) for k, i, o in zip(keys, sizes[:-1], sizes[1:])]


def _block_diag(mats):
    rows = sum(m.shape[0] for m in mats)
    cols = sum(m.shape[1] for m in mats)
    out = np.zeros((rows, cols), np.float32)
    r = c = 0
    for m in mats:
        out[r:r + m.shape[0], c:c + m.shape[1]] = m
        r += m.shape[0]
        c += m.shape[1]
    return out


def _pack_factored(per_factor, input_shared):
    """Pack L per-factor MLPs into lane-concat / block-diagonal layers."""
    packed = []
    for i in range(len(per_factor[0])):
        ws = [f[i][0] for f in per_factor]
        bs = [f[i][1] for f in per_factor]
        if i == 0 and input_shared:
            w = np.concatenate(ws, axis=1)      # shared input -> (din, L*dout)
        else:
            w = _block_diag(ws)                 # per-factor -> (L*din, L*dout)
        b = np.concatenate(bs, axis=0)          # (L*dout,)
        packed.append((w, b))
    return packed


def _round_up(x, m):
    return ((x + m - 1) // m) * m


def init_factored_fwd_model(key, *, input_shape, n_actions, markov_dims,
                            latent_dims, n_units, n_hidden_layers,
                            n_hidden_layers_autoenc):
    # TODO(synk): featurenet loading / freeze_markov / Adam optimizer are
    # training machinery, not forward compute, and are intentionally omitted.
    k_phi, k_enc, k_dec, k_par, k_fwd = jax.random.split(key, 5)
    L, A = latent_dims, n_actions
    ctx = L + A

    phi = _init_mlp(k_phi, [input_shape, n_units, markov_dims])
    enc = _init_mlp(k_enc, [markov_dims] + [n_units] * n_hidden_layers_autoenc
                    + [latent_dims])
    dec = _init_mlp(k_dec, [latent_dims] + [n_units] * n_hidden_layers_autoenc
                    + [markov_dims])
    parents = [_init_mlp(k, [ctx] + [n_units] * n_hidden_layers + [ctx])
               for k in jax.random.split(k_par, L)]
    fwd = [_init_mlp(k, [ctx] + [n_units] * n_hidden_layers + [1])
           for k in jax.random.split(k_fwd, L)]

    # Zero-pad the encoder's last layer to ctx columns so the packed encoder
    # output already sits in the context layout (lanes L..ctx-1 == tanh(0)==0).
    w_last, b_last = enc[-1]
    w_pad = np.zeros((w_last.shape[0], ctx), np.float32)
    w_pad[:, :latent_dims] = w_last
    b_pad = np.zeros((ctx,), np.float32)
    b_pad[:latent_dims] = b_last
    enc[-1] = (w_pad, b_pad)

    par_packed = _pack_factored(parents, input_shared=True)   # layer0 (ctx, L*H)
    fwd_packed = _pack_factored(fwd, input_shared=False)      # all block-diag

    nets = [("phi", phi), ("enc", enc), ("dec", dec),
            ("par", par_packed), ("fwd", fwd_packed)]

    # --- pack every (W, b) into ONE lane-dense slab; static row offsets ------
    all_layers = [lay for _, layers in nets for lay in layers]
    max_out = max(w.shape[1] for w, _ in all_layers)
    slab_w = max(128, _round_up(max_out, 128))

    offsets, rows = [], 0
    for w, _ in all_layers:
        offsets.append(rows)
        rows += _round_up(w.shape[0] + 1, 8)    # W rows + 1 bias row, 8-aligned
    slab = np.zeros((max(8, _round_up(rows, 8)), slab_w), np.float32)

    flat_plan = []
    for (w, b), off in zip(all_layers, offsets):
        din, dout = w.shape
        slab[off:off + din, :dout] = w
        slab[off + din, :dout] = b
        flat_plan.append((off, din, dout))

    plan_by_net, pos = [], 0
    for _, layers in nets:
        plan_by_net.append(tuple(flat_plan[pos:pos + len(layers)]))
        pos += len(layers)

    meta = dict(latent_dims=L, n_actions=A, ctx=ctx, markov_dims=markov_dims,
                input_shape=input_shape)
    return {"slab": jnp.asarray(slab), "plan": tuple(plan_by_net), "meta": meta}


# ----------------------------------------------------------------------------
# Fused forward kernel (built per static structure + compile-time coefs)
# ----------------------------------------------------------------------------
def _build_kernel(plan_by_net, *, B, L, ctx, coefs):
    phi_plan, enc_plan, dec_plan, par_plan, fwd_plan = plan_by_net

    def kernel(x01_ref, a_ref, slab_ref, zf_ref, loss_ref):
        def linear(x, layer):
            off, din, dout = layer
            b = slab_ref[off + din:off + din + 1, :dout]          # (1, dout)
            if din <= 4:
                # tiny-K layer: VPU broadcast mul-adds, no padded MXU pass
                y = b
                for k in range(din):
                    y = y + x[:, k:k + 1] * slab_ref[off + k:off + k + 1, :dout]
                return y
            w = slab_ref[off:off + din, :dout]
            return jnp.dot(x, w, preferred_element_type=jnp.float32) + b

        def apply_net(x, plan, final_act):
            n = len(plan)
            for i, layer in enumerate(plan):
                x = linear(x, layer)
                act = "tanh" if i < n - 1 else final_act
                if act == "tanh":
                    x = jnp.tanh(x)
                elif act == "sigmoid":
                    x = jax.nn.sigmoid(x)
                # "linear": no-op
            return x

        # phi + factored encoder over the stacked [x0; x1]  -> (2B, .)
        x01 = x01_ref[...]
        z01 = apply_net(x01, phi_plan, "tanh")          # (2B, markov)
        zf01w = apply_net(z01, enc_plan, "tanh")        # (2B, ctx), lanes L.. == 0
        zf_ref[...] = zf01w[:, :L]                      # [z0_factored; z1_factored]

        # reconstruction decode of [z0_f; z1_f] early so it can overlap with
        # the ParentsNet/FwdNet chain
        rec01 = apply_net(zf01w[:, :L], dec_plan, "tanh")   # (2B, markov)

        # context = [z0_f, onehot(a)] built with an in-kernel one-hot add
        z0_fw = zf01w[:B]                                # (B, ctx), action lanes 0
        lane = jax.lax.broadcasted_iota(jnp.int32, (B, ctx), 1)
        a_oh = (lane == a_ref[...] + L).astype(jnp.float32)
        context = z0_fw + a_oh                           # (B, ctx)

        # ParentsNet (L factors packed on the lane axis, block-diag layers)
        plik = apply_net(context, par_plan, "sigmoid")   # (B, L*ctx)
        dep = (plik > 0.5).astype(jnp.float32)           # parent_dependencies

        # FwdNet: per-factor dependency-masked contexts, block-diag layers
        ctx_tiled = jnp.concatenate([context] * L, axis=1)     # (B, L*ctx)
        dz_hat = apply_net(ctx_tiled * dep, fwd_plan, "linear")  # (B, L)

        z1_f_hat = z0_fw[:, :L] + dz_hat
        z1_hat = apply_net(z1_f_hat, dec_plan, "tanh")   # (B, markov)

        # losses (same formulas / reductions as FactoredFwdModel.compute_loss)
        z0, z1 = z01[:B], z01[B:]
        z0_rec, z1_rec = rec01[:B], rec01[B:]

        l_fwd = jnp.mean((z1 - z1_hat) ** 2)
        l_fac = jnp.mean(plik)
        adz = jnp.abs(zf01w[B:, :L] - zf01w[:B, :L])
        l1 = jnp.sum(adz, axis=-1, keepdims=True)
        lmax = jnp.max(adz, axis=-1, keepdims=True)
        l_foc = jnp.mean(l1 / (lmax + 1e-6))
        l_rec = 0.5 * (jnp.mean((z0 - z0_rec) ** 2) + jnp.mean((z1 - z1_rec) ** 2))

        # torch returns 0 for a component whose coefficient is 0 (static check)
        if float(coefs["L_fwd"]) == 0.0:
            l_fwd = jnp.float32(0.0)
        if float(coefs["L_fac"]) == 0.0:
            l_fac = jnp.float32(0.0)
        if float(coefs["L_foc"]) == 0.0:
            l_foc = jnp.float32(0.0)
        if float(coefs["L_rec"]) == 0.0:
            l_rec = jnp.float32(0.0)

        # weighted total, sorted(keys) order == ['L_fac','L_foc','L_fwd','L_rec']
        total = (jnp.float32(coefs["L_fac"]) * l_fac
                 + jnp.float32(coefs["L_foc"]) * l_foc
                 + jnp.float32(coefs["L_fwd"]) * l_fwd
                 + jnp.float32(coefs["L_rec"]) * l_rec)

        loss_ref[0] = l_fac
        loss_ref[1] = l_foc
        loss_ref[2] = l_fwd
        loss_ref[3] = l_rec
        loss_ref[4] = total

    return kernel


def _cost_estimate(plan_by_net, B, slab_nbytes, in_bytes, out_bytes):
    rows = (2 * B, 2 * B, 3 * B, B, B)       # phi, enc, dec(x2), par, fwd
    flops, trans = 0, 0
    for m, plan in zip(rows, plan_by_net):
        for (_, din, dout) in plan:
            flops += 2 * m * din * dout
            trans += m * dout
    return pl.CostEstimate(flops=int(flops), transcendentals=int(trans),
                           bytes_accessed=int(slab_nbytes + in_bytes + out_bytes))


# ----------------------------------------------------------------------------
# Forward pass (train_batch compute path; no gradients / optimizer step)
# ----------------------------------------------------------------------------
def factored_fwd_forward(model, coefs, x0, a, x1):
    meta = model["meta"]
    L, ctx = meta["latent_dims"], meta["ctx"]
    B = x0.shape[0]
    assert B % 8 == 0, "B must be a multiple of 8 for f32 sublane tiling"

    x01 = jnp.concatenate([x0, x1], axis=0).astype(jnp.float32)   # (2B, in)
    a2 = a.astype(jnp.int32).reshape(B, 1)

    kernel = _build_kernel(model["plan"], B=B, L=L, ctx=ctx, coefs=coefs)
    vmem = pl.BlockSpec(memory_space=pltpu.MemorySpace.VMEM)
    smem = pl.BlockSpec(memory_space=pltpu.MemorySpace.SMEM)

    ce = _cost_estimate(model["plan"], B, model["slab"].size * 4,
                        x01.size * 4 + a2.size * 4, 2 * B * L * 4 + 5 * 4)

    zf, losses = pl.pallas_call(
        kernel,
        out_shape=(jax.ShapeDtypeStruct((2 * B, L), jnp.float32),
                   jax.ShapeDtypeStruct((5,), jnp.float32)),
        in_specs=[vmem, vmem, vmem],
        out_specs=(vmem, smem),
        cost_estimate=ce,
    )(x01, a2, model["slab"])

    z0_factored, z1_factored = zf[:B], zf[B:]
    loss_info = {"L_fac": losses[0], "L_foc": losses[1], "L_fwd": losses[2],
                 "L_rec": losses[3], "L": losses[4]}
    # TODO(synk): featurenet.train_batch / .backward() / optimizer.step() are
    # training machinery, not forward compute, and are intentionally omitted.
    # NOTE: dep = (plik > 0.5) is a hard threshold (matches torch forward);
    # it is non-differentiable if this kernel is later wrapped for autograd.
    return z0_factored, z1_factored, loss_info


# ----------------------------------------------------------------------------
if __name__ == "__main__":
    # small config consistent with the module's constructor args
    B = 8
    INPUT_SHAPE = 2
    N_ACTIONS = 4
    MARKOV_DIMS = 8
    LATENT_DIMS = 4
    N_UNITS = 32
    N_HIDDEN = 1
    N_HIDDEN_AUTOENC = 1
    COEFS = {"L_fwd": 1.0, "L_fac": 0.003, "L_foc": 0.003, "L_rec": 1.0}

    key = jax.random.PRNGKey(0)
    k_param, k_x0, k_x1, k_a = jax.random.split(key, 4)

    model = init_factored_fwd_model(
        k_param,
        input_shape=INPUT_SHAPE, n_actions=N_ACTIONS, markov_dims=MARKOV_DIMS,
        latent_dims=LATENT_DIMS, n_units=N_UNITS, n_hidden_layers=N_HIDDEN,
        n_hidden_layers_autoenc=N_HIDDEN_AUTOENC)

    x0 = jax.random.normal(k_x0, (B, INPUT_SHAPE), jnp.float32)
    x1 = jax.random.normal(k_x1, (B, INPUT_SHAPE), jnp.float32)
    a = jax.random.randint(k_a, (B,), 0, N_ACTIONS, jnp.int32)

    fwd_fn = jax.jit(functools.partial(factored_fwd_forward, model, COEFS))
    z0_factored, z1_factored, loss_info = fwd_fn(x0, a, x1)

    jax.block_until_ready((z0_factored, z1_factored, loss_info["L"]))
    assert z0_factored.shape == (B, LATENT_DIMS)
    assert z1_factored.shape == (B, LATENT_DIMS)
    assert np.isfinite(float(loss_info["L"]))
    print("KERNEL_OK")
</pallas_src>

<mosaic_0001>
module attributes {stable_mosaic.version = 11 : i64} {
  func.func @kernel(%arg0: memref<16x2xf32, #tpu.memory_space<vmem>>, %arg1: memref<8x1xi32, #tpu.memory_space<vmem>>, %arg2: memref<480x128xf32, #tpu.memory_space<vmem>>, %arg3: memref<16x4xf32, #tpu.memory_space<vmem>>, %arg4: memref<5xf32, #tpu.memory_space<smem>>) attributes {dimension_semantics = [], scalar_prefetch = 0 : i64, scratch_operands = 0 : i64, tpu.core_type = #tpu.core_type<tc>} {
    %c0 = arith.constant 0 : index
    %c0_0 = arith.constant 0 : index
    %0 = vector.load %arg0[%c0, %c0_0] : memref<16x2xf32, #tpu.memory_space<vmem>>, vector<16x2xf32>
    %c2 = arith.constant 2 : index
    %c0_1 = arith.constant 0 : index
    %1 = vector.load %arg2[%c2, %c0_1] : memref<480x128xf32, #tpu.memory_space<vmem>>, vector<1x32xf32>
    %2 = vector.extract_strided_slice %0 {offsets = [0, 0], sizes = [16, 1], strides = [1, 1]} : vector<16x2xf32> to vector<16x1xf32>
    %c0_2 = arith.constant 0 : index
    %c0_3 = arith.constant 0 : index
    %3 = vector.load %arg2[%c0_2, %c0_3] : memref<480x128xf32, #tpu.memory_space<vmem>>, vector<1x32xf32>
    %4 = vector.broadcast %2 : vector<16x1xf32> to vector<16x32xf32>
    %5 = vector.broadcast %3 : vector<1x32xf32> to vector<16x32xf32>
    %6 = arith.mulf %4, %5 : vector<16x32xf32>
    %7 = vector.broadcast %1 : vector<1x32xf32> to vector<16x32xf32>
    %8 = arith.addf %7, %6 : vector<16x32xf32>
    %9 = vector.extract_strided_slice %0 {offsets = [0, 1], sizes = [16, 1], strides = [1, 1]} : vector<16x2xf32> to vector<16x1xf32>
    %c1 = arith.constant 1 : index
    %c0_4 = arith.constant 0 : index
    %10 = vector.load %arg2[%c1, %c0_4] : memref<480x128xf32, #tpu.memory_space<vmem>>, vector<1x32xf32>
    %11 = vector.broadcast %9 : vector<16x1xf32> to vector<16x32xf32>
    %12 = vector.broadcast %10 : vector<1x32xf32> to vector<16x32xf32>
    %13 = arith.mulf %11, %12 : vector<16x32xf32>
    %14 = arith.addf %8, %13 : vector<16x32xf32>
    %15 = math.tanh %14 : vector<16x32xf32>
    %c40 = arith.constant 40 : index
    %c0_5 = arith.constant 0 : index
    %16 = vector.load %arg2[%c40, %c0_5] : memref<480x128xf32, #tpu.memory_space<vmem>>, vector<1x8xf32>
    %c8 = arith.constant 8 : index
    %c0_6 = arith.constant 0 : index
    %17 = vector.load %arg2[%c8, %c0_6] : memref<480x128xf32, #tpu.memory_space<vmem>>, vector<32x8xf32>
    %cst = arith.constant dense<0.000000e+00> : vector<16x8xf32>
    %18 = tpu.matmul %15, %17, %cst {dimension_numbers = #tpu.dot_dimension_numbers<[1], [0], [0], [1], [0, 0, 1, 1], [], []>} : vector<16x32xf32>, vector<32x8xf32>, vector<16x8xf32> -> vector<16x8xf32>
    %19 = vector.broadcast %16 : vector<1x8xf32> to vector<16x8xf32>
    %20 = arith.addf %18, %19 : vector<16x8xf32>
    %21 = math.tanh %20 : vector<16x8xf32>
    %c56 = arith.constant 56 : index
    %c0_7 = arith.constant 0 : index
    %22 = vector.load %arg2[%c56, %c0_7] : memref<480x128xf32, #tpu.memory_space<vmem>>, vector<1x32xf32>
    %c48 = arith.constant 48 : index
    %c0_8 = arith.constant 0 : index
    %23 = vector.load %arg2[%c48, %c0_8] : memref<480x128xf32, #tpu.memory_space<vmem>>, vector<8x32xf32>
    %cst_9 = arith.constant dense<0.000000e+00> : vector<16x32xf32>
    %24 = tpu.matmul %21, %23, %cst_9 {dimension_numbers = #tpu.dot_dimension_numbers<[1], [0], [0], [1], [0, 0, 1, 1], [], []>} : vector<16x8xf32>, vector<8x32xf32>, vector<16x32xf32> -> vector<16x32xf32>
    %25 = vector.broadcast %22 : vector<1x32xf32> to vector<16x32xf32>
    %26 = arith.addf %24, %25 : vector<16x32xf32>
    %27 = math.tanh %26 : vector<16x32xf32>
    %c96 = arith.constant 96 : index
    %c0_10 = arith.constant 0 : index
    %28 = vector.load %arg2[%c96, %c0_10] : memref<480x128xf32, #tpu.memory_space<vmem>>, vector<1x8xf32>
    %c64 = arith.constant 64 : index
    %c0_11 = arith.constant 0 : index
    %29 = vector.load %arg2[%c64, %c0_11] : memref<480x128xf32, #tpu.memory_space<vmem>>, vector<32x8xf32>
    %cst_12 = arith.constant dense<0.000000e+00> : vector<16x8xf32>
    %30 = tpu.matmul %27, %29, %cst_12 {dimension_numbers = #tpu.dot_dimension_numbers<[1], [0], [0], [1], [0, 0, 1, 1], [], []>} : vector<16x32xf32>, vector<32x8xf32>, vector<16x8xf32> -> vector<16x8xf32>
    %31 = vector.broadcast %28 : vector<1x8xf32> to vector<16x8xf32>
    %32 = arith.addf %30, %31 : vector<16x8xf32>
    %33 = math.tanh %32 : vector<16x8xf32>
    %34 = vector.extract_strided_slice %33 {offsets = [0, 0], sizes = [16, 4], strides = [1, 1]} : vector<16x8xf32> to vector<16x4xf32>
    %c0_13 = arith.constant 0 : index
    %c0_14 = arith.constant 0 : index
    %35 = vector.load %arg3[%c0_13, %c0_14] : memref<16x4xf32, #tpu.memory_space<vmem>>, vector<16x4xf32>
    tpu.vector_store %arg3[%c0_13, %c0_14], %34 {strides = array<i32>} : memref<16x4xf32, #tpu.memory_space<vmem>>, vector<16x4xf32>,
    %36 = vector.extract_strided_slice %33 {offsets = [0, 0], sizes = [16, 4], strides = [1, 1]} : vector<16x8xf32> to vector<16x4xf32>
    %c108 = arith.constant 108 : index
    %c0_15 = arith.constant 0 : index
    %37 = vector.load %arg2[%c108, %c0_15] : memref<480x128xf32, #tpu.memory_space<vmem>>, vector<1x32xf32>
    %38 = vector.extract_strided_slice %36 {offsets = [0, 0], sizes = [16, 1], strides = [1, 1]} : vector<16x4xf32> to vector<16x1xf32>
    %c104 = arith.constant 104 : index
    %c0_16 = arith.constant 0 : index
    %39 = vector.load %arg2[%c104, %c0_16] : memref<480x128xf32, #tpu.memory_space<vmem>>, vector<1x32xf32>
    %40 = vector.broadcast %38 : vector<16x1xf32> to vector<16x32xf32>
    %41 = vector.broadcast %39 : vector<1x32xf32> to vector<16x32xf32>
    %42 = arith.mulf %40, %41 : vector<16x32xf32>
    %43 = vector.broadcast %37 : vector<1x32xf32> to vector<16x32xf32>
    %44 = arith.addf %43, %42 : vector<16x32xf32>
    %45 = vector.extract_strided_slice %36 {offsets = [0, 1], sizes = [16, 1], strides = [1, 1]} : vector<16x4xf32> to vector<16x1xf32>
    %c105 = arith.constant 105 : index
    %c0_17 = arith.constant 0 : index
    %46 = vector.load %arg2[%c105, %c0_17] : memref<480x128xf32, #tpu.memory_space<vmem>>, vector<1x32xf32>
    %47 = vector.broadcast %45 : vector<16x1xf32> to vector<16x32xf32>
    %48 = vector.broadcast %46 : vector<1x32xf32> to vector<16x32xf32>
    %49 = arith.mulf %47, %48 : vector<16x32xf32>
    %50 = arith.addf %44, %49 : vector<16x32xf32>
    %51 = vector.extract_strided_slice %36 {offsets = [0, 2], sizes = [16, 1], strides = [1, 1]} : vector<16x4xf32> to vector<16x1xf32>
    %c106 = arith.constant 106 : index
    %c0_18 = arith.constant 0 : index
    %52 = vector.load %arg2[%c106, %c0_18] : memref<480x128xf32, #tpu.memory_space<vmem>>, vector<1x32xf32>
    %53 = vector.broadcast %51 : vector<16x1xf32> to vector<16x32xf32>
    %54 = vector.broadcast %52 : vector<1x32xf32> to vector<16x32xf32>
    %55 = arith.mulf %53, %54 : vector<16x32xf32>
    %56 = arith.addf %50, %55 : vector<16x32xf32>
    %57 = vector.extract_strided_slice %36 {offsets = [0, 3], sizes = [16, 1], strides = [1, 1]} : vector<16x4xf32> to vector<16x1xf32>
    %c107 = arith.constant 107 : index
    %c0_19 = arith.constant 0 : index
    %58 = vector.load %arg2[%c107, %c0_19] : memref<480x128xf32, #tpu.memory_space<vmem>>, vector<1x32xf32>
    %59 = vector.broadcast %57 : vector<16x1xf32> to vector<16x32xf32>
    %60 = vector.broadcast %58 : vector<1x32xf32> to vector<16x32xf32>
    %61 = arith.mulf %59, %60 : vector<16x32xf32>
    %62 = arith.addf %56, %61 : vector<16x32xf32>
    %63 = math.tanh %62 : vector<16x32xf32>
    %c144 = arith.constant 144 : index
    %c0_20 = arith.constant 0 : index
    %64 = vector.load %arg2[%c144, %c0_20] : memref<480x128xf32, #tpu.memory_space<vmem>>, vector<1x8xf32>
    %c112 = arith.constant 112 : index
    %c0_21 = arith.constant 0 : index
    %65 = vector.load %arg2[%c112, %c0_21] : memref<480x128xf32, #tpu.memory_space<vmem>>, vector<32x8xf32>
    %cst_22 = arith.constant dense<0.000000e+00> : vector<16x8xf32>
    %66 = tpu.matmul %63, %65, %cst_22 {dimension_numbers = #tpu.dot_dimension_numbers<[1], [0], [0], [1], [0, 0, 1, 1], [], []>} : vector<16x32xf32>, vector<32x8xf32>, vector<16x8xf32> -> vector<16x8xf32>
    %67 = vector.broadcast %64 : vector<1x8xf32> to vector<16x8xf32>
    %68 = arith.addf %66, %67 : vector<16x8xf32>
    %69 = math.tanh %68 : vector<16x8xf32>
    %70 = vector.extract_strided_slice %33 {offsets = [0, 0], sizes = [8, 8], strides = [1, 1]} : vector<16x8xf32> to vector<8x8xf32>
    %71 = tpu.iota {dimensions = array<i32: 1>} : vector<8x8xi32>
    %c0_23 = arith.constant 0 : index
    %c0_24 = arith.constant 0 : index
    %72 = vector.load %arg1[%c0_23, %c0_24] : memref<8x1xi32, #tpu.memory_space<vmem>>, vector<8x1xi32>
    %c4_i32 = arith.constant 4 : i32
    %73 = vector.broadcast %c4_i32 : i32 to vector<8x1xi32>
    %74 = arith.addi %72, %73 : vector<8x1xi32>
    %75 = vector.broadcast %74 : vector<8x1xi32> to vector<8x8xi32>
    %76 = arith.cmpi eq, %71, %75 : vector<8x8xi32>
    %77 = arith.extui %76 : vector<8x8xi1> to vector<8x8xi32>
    %78 = arith.sitofp %77 : vector<8x8xi32> to vector<8x8xf32>
    %79 = arith.addf %70, %78 : vector<8x8xf32>
    %c160 = arith.constant 160 : index
    %c0_25 = arith.constant 0 : index
    %80 = vector.load %arg2[%c160, %c0_25] : memref<480x128xf32, #tpu.memory_space<vmem>>, vector<1x128xf32>
    %c152 = arith.constant 152 : index
    %c0_26 = arith.constant 0 : index
    %81 = vector.load %arg2[%c152, %c0_26] : memref<480x128xf32, #tpu.memory_space<vmem>>, vector<8x128xf32>
    %cst_27 = arith.constant dense<0.000000e+00> : vector<8x128xf32>
    %82 = tpu.matmul %79, %81, %cst_27 {dimension_numbers = #tpu.dot_dimension_numbers<[1], [0], [0], [1], [0, 0, 1, 1], [], []>} : vector<8x8xf32>, vector<8x128xf32>, vector<8x128xf32> -> vector<8x128xf32>
    %83 = vector.broadcast %80 : vector<1x128xf32> to vector<8x128xf32>
    %84 = arith.addf %82, %83 : vector<8x128xf32>
    %85 = math.tanh %84 : vector<8x128xf32>
    %c296 = arith.constant 296 : index
    %c0_28 = arith.constant 0 : index
    %86 = vector.load %arg2[%c296, %c0_28] : memref<480x128xf32, #tpu.memory_space<vmem>>, vector<1x32xf32>
    %c168 = arith.constant 168 : index
    %c0_29 = arith.constant 0 : index
    %87 = vector.load %arg2[%c168, %c0_29] : memref<480x128xf32, #tpu.memory_space<vmem>>, vector<128x32xf32>
    %cst_30 = arith.constant dense<0.000000e+00> : vector<8x32xf32>
    %88 = tpu.matmul %85, %87, %cst_30 {dimension_numbers = #tpu.dot_dimension_numbers<[1], [0], [0], [1], [0, 0, 1, 1], [], []>} : vector<8x128xf32>, vector<128x32xf32>, vector<8x32xf32> -> vector<8x32xf32>
    %89 = vector.broadcast %86 : vector<1x32xf32> to vector<8x32xf32>
    %90 = arith.addf %88, %89 : vector<8x32xf32>
    %91 = arith.negf %90 : vector<8x32xf32>
    %92 = math.exp %91 : vector<8x32xf32>
    %cst_31 = arith.constant 1.000000e+00 : f32
    %93 = vector.broadcast %cst_31 : f32 to vector<8x32xf32>
    %94 = arith.addf %93, %92 : vector<8x32xf32>
    %95 = arith.divf %93, %94 : vector<8x32xf32>
    %cst_32 = arith.constant 5.000000e-01 : f32
    %96 = vector.broadcast %cst_32 : f32 to vector<8x32xf32>
    %97 = arith.cmpf ogt, %95, %96 : vector<8x32xf32>
    %98 = arith.extui %97 : vector<8x32xi1> to vector<8x32xi32>
    %99 = arith.sitofp %98 : vector<8x32xi32> to vector<8x32xf32>
    %100 = tpu.concatenate %79, %79, %79, %79 in 1 : vector<8x8xf32>, vector<8x8xf32>, vector<8x8xf32>, vector<8x8xf32> -> vector<8x32xf32>
    %101 = arith.mulf %100, %99 : vector<8x32xf32>
    %c336 = arith.constant 336 : index
    %c0_33 = arith.constant 0 : index
    %102 = vector.load %arg2[%c336, %c0_33] : memref<480x128xf32, #tpu.memory_space<vmem>>, vector<1x128xf32>
    %c304 = arith.constant 304 : index
    %c0_34 = arith.constant 0 : index
    %103 = vector.load %arg2[%c304, %c0_34] : memref<480x128xf32, #tpu.memory_space<vmem>>, vector<32x128xf32>
    %cst_35 = arith.constant dense<0.000000e+00> : vector<8x128xf32>
    %104 = tpu.matmul %101, %103, %cst_35 {dimension_numbers = #tpu.dot_dimension_numbers<[1], [0], [0], [1], [0, 0, 1, 1], [], []>} : vector<8x32xf32>, vector<32x128xf32>, vector<8x128xf32> -> vector<8x128xf32>
    %105 = vector.broadcast %102 : vector<1x128xf32> to vector<8x128xf32>
    %106 = arith.addf %104, %105 : vector<8x128xf32>
    %107 = math.tanh %106 : vector<8x128xf32>
    %c472 = arith.constant 472 : index
    %c0_36 = arith.constant 0 : index
    %108 = vector.load %arg2[%c472, %c0_36] : memref<480x128xf32, #tpu.memory_space<vmem>>, vector<1x4xf32>
    %c344 = arith.constant 344 : index
    %c0_37 = arith.constant 0 : index
    %109 = vector.load %arg2[%c344, %c0_37] : memref<480x128xf32, #tpu.memory_space<vmem>>, vector<128x4xf32>
    %cst_38 = arith.constant dense<0.000000e+00> : vector<8x4xf32>
    %110 = tpu.matmul %107, %109, %cst_38 {dimension_numbers = #tpu.dot_dimension_numbers<[1], [0], [0], [1], [0, 0, 1, 1], [], []>} : vector<8x128xf32>, vector<128x4xf32>, vector<8x4xf32> -> vector<8x4xf32>
    %111 = vector.broadcast %108 : vector<1x4xf32> to vector<8x4xf32>
    %112 = arith.addf %110, %111 : vector<8x4xf32>
    %113 = vector.extract_strided_slice %70 {offsets = [0, 0], sizes = [8, 4], strides = [1, 1]} : vector<8x8xf32> to vector<8x4xf32>
    %114 = arith.addf %113, %112 : vector<8x4xf32>
    %c108_39 = arith.constant 108 : index
    %c0_40 = arith.constant 0 : index
    %115 = vector.load %arg2[%c108_39, %c0_40] : memref<480x128xf32, #tpu.memory_space<vmem>>, vector<1x32xf32>
    %116 = vector.extract_strided_slice %114 {offsets = [0, 0], sizes = [8, 1], strides = [1, 1]} : vector<8x4xf32> to vector<8x1xf32>
    %c104_41 = arith.constant 104 : index
    %c0_42 = arith.constant 0 : index
    %117 = vector.load %arg2[%c104_41, %c0_42] : memref<480x128xf32, #tpu.memory_space<vmem>>, vector<1x32xf32>
    %118 = vector.broadcast %116 : vector<8x1xf32> to vector<8x32xf32>
    %119 = vector.broadcast %117 : vector<1x32xf32> to vector<8x32xf32>
    %120 = arith.mulf %118, %119 : vector<8x32xf32>
    %121 = vector.broadcast %115 : vector<1x32xf32> to vector<8x32xf32>
    %122 = arith.addf %121, %120 : vector<8x32xf32>
    %123 = vector.extract_strided_slice %114 {offsets = [0, 1], sizes = [8, 1], strides = [1, 1]} : vector<8x4xf32> to vector<8x1xf32>
    %c105_43 = arith.constant 105 : index
    %c0_44 = arith.constant 0 : index
    %124 = vector.load %arg2[%c105_43, %c0_44] : memref<480x128xf32, #tpu.memory_space<vmem>>, vector<1x32xf32>
    %125 = vector.broadcast %123 : vector<8x1xf32> to vector<8x32xf32>
    %126 = vector.broadcast %124 : vector<1x32xf32> to vector<8x32xf32>
    %127 = arith.mulf %125, %126 : vector<8x32xf32>
    %128 = arith.addf %122, %127 : vector<8x32xf32>
    %129 = vector.extract_strided_slice %114 {offsets = [0, 2], sizes = [8, 1], strides = [1, 1]} : vector<8x4xf32> to vector<8x1xf32>
    %c106_45 = arith.constant 106 : index
    %c0_46 = arith.constant 0 : index
    %130 = vector.load %arg2[%c106_45, %c0_46] : memref<480x128xf32, #tpu.memory_space<vmem>>, vector<1x32xf32>
    %131 = vector.broadcast %129 : vector<8x1xf32> to vector<8x32xf32>
    %132 = vector.broadcast %130 : vector<1x32xf32> to vector<8x32xf32>
    %133 = arith.mulf %131, %132 : vector<8x32xf32>
    %134 = arith.addf %128, %133 : vector<8x32xf32>
    %135 = vector.extract_strided_slice %114 {offsets = [0, 3], sizes = [8, 1], strides = [1, 1]} : vector<8x4xf32> to vector<8x1xf32>
    %c107_47 = arith.constant 107 : index
    %c0_48 = arith.constant 0 : index
    %136 = vector.load %arg2[%c107_47, %c0_48] : memref<480x128xf32, #tpu.memory_space<vmem>>, vector<1x32xf32>
    %137 = vector.broadcast %135 : vector<8x1xf32> to vector<8x32xf32>
    %138 = vector.broadcast %136 : vector<1x32xf32> to vector<8x32xf32>
    %139 = arith.mulf %137, %138 : vector<8x32xf32>
    %140 = arith.addf %134, %139 : vector<8x32xf32>
    %141 = math.tanh %140 : vector<8x32xf32>
    %c144_49 = arith.constant 144 : index
    %c0_50 = arith.constant 0 : index
    %142 = vector.load %arg2[%c144_49, %c0_50] : memref<480x128xf32, #tpu.memory_space<vmem>>, vector<1x8xf32>
    %c112_51 = arith.constant 112 : index
    %c0_52 = arith.constant 0 : index
    %143 = vector.load %arg2[%c112_51, %c0_52] : memref<480x128xf32, #tpu.memory_space<vmem>>, vector<32x8xf32>
    %cst_53 = arith.constant dense<0.000000e+00> : vector<8x8xf32>
    %144 = tpu.matmul %141, %143, %cst_53 {dimension_numbers = #tpu.dot_dimension_numbers<[1], [0], [0], [1], [0, 0, 1, 1], [], []>} : vector<8x32xf32>, vector<32x8xf32>, vector<8x8xf32> -> vector<8x8xf32>
    %145 = vector.broadcast %142 : vector<1x8xf32> to vector<8x8xf32>
    %146 = arith.addf %144, %145 : vector<8x8xf32>
    %147 = math.tanh %146 : vector<8x8xf32>
    %148 = vector.extract_strided_slice %21 {offsets = [0, 0], sizes = [8, 8], strides = [1, 1]} : vector<16x8xf32> to vector<8x8xf32>
    %149 = vector.extract_strided_slice %21 {offsets = [8, 0], sizes = [8, 8], strides = [1, 1]} : vector<16x8xf32> to vector<8x8xf32>
    %150 = vector.extract_strided_slice %69 {offsets = [0, 0], sizes = [8, 8], strides = [1, 1]} : vector<16x8xf32> to vector<8x8xf32>
    %151 = vector.extract_strided_slice %69 {offsets = [8, 0], sizes = [8, 8], strides = [1, 1]} : vector<16x8xf32> to vector<8x8xf32>
    %152 = arith.subf %149, %147 : vector<8x8xf32>
    %153 = arith.mulf %152, %152 : vector<8x8xf32>
    %154 = vector.shape_cast %153 : vector<8x8xf32> to vector<1x8x8xf32>
    %cst_54 = arith.constant dense<0.000000e+00> : vector<1xf32>
    %155 = vector.multi_reduction <add>, %154, %cst_54 [1, 2] : vector<1x8x8xf32> to vector<1xf32>
    %156 = vector.shape_cast %155 : vector<1xf32> to vector<1x1x1xf32>
    %157 = vector.extract %156[0, 0, 0] : f32 from vector<1x1x1xf32>
    %cst_55 = arith.constant 6.400000e+01 : f32
    %158 = arith.divf %157, %cst_55 : f32
    %159 = vector.shape_cast %95 : vector<8x32xf32> to vector<1x8x32xf32>
    %cst_56 = arith.constant dense<0.000000e+00> : vector<1xf32>
    %160 = vector.multi_reduction <add>, %159, %cst_56 [1, 2] : vector<1x8x32xf32> to vector<1xf32>
    %161 = vector.shape_cast %160 : vector<1xf32> to vector<1x1x1xf32>
    %162 = vector.extract %161[0, 0, 0] : f32 from vector<1x1x1xf32>
    %cst_57 = arith.constant 2.560000e+02 : f32
    %163 = arith.divf %162, %cst_57 : f32
    %164 = vector.extract_strided_slice %33 {offsets = [8, 0], sizes = [8, 4], strides = [1, 1]} : vector<16x8xf32> to vector<8x4xf32>
    %165 = vector.extract_strided_slice %33 {offsets = [0, 0], sizes = [8, 4], strides = [1, 1]} : vector<16x8xf32> to vector<8x4xf32>
    %166 = arith.subf %164, %165 : vector<8x4xf32>
    %167 = math.absf %166 : vector<8x4xf32>
    %cst_58 = arith.constant dense<0.000000e+00> : vector<8xf32>
    %168 = vector.multi_reduction <add>, %167, %cst_58 [1] : vector<8x4xf32> to vector<8xf32>
    %169 = vector.shape_cast %168 : vector<8xf32> to vector<8x1xf32>
    %cst_59 = arith.constant dense<0xFF800000> : vector<8xf32>
    %170 = vector.multi_reduction <maximumf>, %167, %cst_59 [1] : vector<8x4xf32> to vector<8xf32>
    %171 = vector.shape_cast %170 : vector<8xf32> to vector<8x1xf32>
    %cst_60 = arith.constant 9.99999997E-7 : f32
    %172 = vector.broadcast %cst_60 : f32 to vector<8x1xf32>
    %173 = arith.addf %171, %172 : vector<8x1xf32>
    %174 = arith.divf %169, %173 : vector<8x1xf32>
    %175 = vector.shape_cast %174 : vector<8x1xf32> to vector<1x8x1xf32>
    %cst_61 = arith.constant dense<0.000000e+00> : vector<1xf32>
    %176 = vector.multi_reduction <add>, %175, %cst_61 [1, 2] : vector<1x8x1xf32> to vector<1xf32>
    %177 = vector.shape_cast %176 : vector<1xf32> to vector<1x1x1xf32>
    %178 = vector.extract %177[0, 0, 0] : f32 from vector<1x1x1xf32>
    %cst_62 = arith.constant 8.000000e+00 : f32
    %179 = arith.divf %178, %cst_62 : f32
    %180 = arith.subf %148, %150 : vector<8x8xf32>
    %181 = arith.mulf %180, %180 : vector<8x8xf32>
    %182 = vector.shape_cast %181 : vector<8x8xf32> to vector<1x8x8xf32>
    %cst_63 = arith.constant dense<0.000000e+00> : vector<1xf32>
    %183 = vector.multi_reduction <add>, %182, %cst_63 [1, 2] : vector<1x8x8xf32> to vector<1xf32>
    %184 = vector.shape_cast %183 : vector<1xf32> to vector<1x1x1xf32>
    %185 = vector.extract %184[0, 0, 0] : f32 from vector<1x1x1xf32>
    %cst_64 = arith.constant 6.400000e+01 : f32
    %186 = arith.divf %185, %cst_64 : f32
    %187 = arith.subf %149, %151 : vector<8x8xf32>
    %188 = arith.mulf %187, %187 : vector<8x8xf32>
    %189 = vector.shape_cast %188 : vector<8x8xf32> to vector<1x8x8xf32>
    %cst_65 = arith.constant dense<0.000000e+00> : vector<1xf32>
    %190 = vector.multi_reduction <add>, %189, %cst_65 [1, 2] : vector<1x8x8xf32> to vector<1xf32>
    %191 = vector.shape_cast %190 : vector<1xf32> to vector<1x1x1xf32>
    %192 = vector.extract %191[0, 0, 0] : f32 from vector<1x1x1xf32>
    %cst_66 = arith.constant 6.400000e+01 : f32
    %193 = arith.divf %192, %cst_66 : f32
    %194 = arith.addf %186, %193 : f32
    %cst_67 = arith.constant 5.000000e-01 : f32
    %195 = arith.mulf %cst_67, %194 : f32
    %cst_68 = arith.constant 3.000000e-03 : f32
    %196 = arith.mulf %cst_68, %163 : f32
    %cst_69 = arith.constant 3.000000e-03 : f32
    %197 = arith.mulf %cst_69, %179 : f32
    %198 = arith.addf %196, %197 : f32
    %cst_70 = arith.constant 1.000000e+00 : f32
    %199 = arith.mulf %cst_70, %158 : f32
    %200 = arith.addf %198, %199 : f32
    %cst_71 = arith.constant 1.000000e+00 : f32
    %201 = arith.mulf %cst_71, %195 : f32
    %202 = arith.addf %200, %201 : f32
    %c0_72 = arith.constant 0 : index
    %203 = memref.load %arg4[%c0_72] : memref<5xf32, #tpu.memory_space<smem>>
    memref.store %163, %arg4[%c0_72] : memref<5xf32, #tpu.memory_space<smem>>
    %c1_73 = arith.constant 1 : index
    %204 = memref.load %arg4[%c1_73] : memref<5xf32, #tpu.memory_space<smem>>
    memref.store %179, %arg4[%c1_73] : memref<5xf32, #tpu.memory_space<smem>>
    %c2_74 = arith.constant 2 : index
    %205 = memref.load %arg4[%c2_74] : memref<5xf32, #tpu.memory_space<smem>>
    memref.store %158, %arg4[%c2_74] : memref<5xf32, #tpu.memory_space<smem>>
    %c3 = arith.constant 3 : index
    %206 = memref.load %arg4[%c3] : memref<5xf32, #tpu.memory_space<smem>>
    memref.store %195, %arg4[%c3] : memref<5xf32, #tpu.memory_space<smem>>
    %c4 = arith.constant 4 : index
    %207 = memref.load %arg4[%c4] : memref<5xf32, #tpu.memory_space<smem>>
    memref.store %202, %arg4[%c4] : memref<5xf32, #tpu.memory_space<smem>>
    return
  }
}

</mosaic_0001>

<bundles_post_ra>
// kernel: factored_fwd_forward.1
= control target key start
LH: loop header
LB: loop body
LE: loop exit
PB: predicated region body
PF: predicated region fallthrough
CT: control target
= control target key end

     0   :  { %10 = vsyncpa [#allocation3], 0  ;;  %s1765_s0 = inlined_call_operand.vmem [shape: f32[16,2], index: 0, kind: input, shape index: {}]   ;;  %s1766_s1 = inlined_call_operand.vmem [shape: s32[8,1], index: 1, kind: input, shape index: {}]   ;;  %s1767_s2 = inlined_call_operand.hbm [shape: f32[480,128], index: 2, kind: input, shape index: {}]   ;;  %s1768_s3 = inlined_call_operand.vmem [shape: f32[16,4], index: 3, kind: output, shape index: {0}]   ;;  %s1769_s4 = inlined_call_operand.vmem [shape: f32[5], index: 4, kind: output, shape index: {1}]  }
   0x1   :  { %11 = vsyncpa [#allocation4], 0  ;;  %s1552_s15 = smov [#allocation2]   ;;  %s1514_s19 = scalar_lea.hbm %s1767_s2, 7680 }
   0x2   :  { %s21_s16 = sshll.u32 %s1552_s15, 4  ;;  %p1515_p0 = scmp.ne.s32.totalorder %s1767_s2, %s1514_s19  ;;  %s22_s16 = int_to_ptr.vmem [resolvable:$true] %s21_s16 }
   0x3   :  { %p1518_p1 = scmp.lt.u32.totalorder %s1514_s19, %s1767_s2 }
   0x5   :  { %p1520_p2 = pnand %p1518_p1, %p1515_p0 }
   0x7   :  { %1523 = shalt.err (!%p1520_p2)
}
   0x8   :  { %s1524_s24 = scalar_lea.vmem %s22_s16, 7680  ;;  %p1529_p4 = scmp.lt.s32.totalorder %s22_s16, %s22_s16 }
   0x9   :  { %p1525_p3 = scmp.ne.s32.totalorder %s22_s16, %s1524_s24  ;;  %p1530_p5 = scmp.lt.s32.totalorder %s1524_s24, %s1524_s24 }
   0xb   :  { %p1531_p6 = por %p1530_p5, %p1529_p4 }
   0xd   :  { %p1532_p7 = pnand %p1531_p6, %p1525_p3 }
   0xf   :  { %1535 = shalt.err (!%p1532_p7)
}
  0x10   :  { %s1553_s25 = smov 128   ;;  %s1554_s26 = smov 8  }
  0x11   :  { %27 = dma.hbm_to_vmem [thread:$0]  %s1767_s2, 7680, %s22_s16, [#allocation3], %s1553_s25, %s1553_s25, %s1554_s26  }
  0x12   :  { %1548 = dma.done.wait [#allocation3], 7680  }
  0x13   :  { %1549 = vsyncadd [#allocation3], 4294959616  ;;  %v1555_v0 = vmov 1   ;;  %v1556_v1 = vmov 0   ;;  %v31_v2 = vld [vmem:[%s1765_s0] sm:$0xff]  ;;  %v32_v3 = vld [vmem:[%s1765_s0 + $0x8] sm:$0xff]  ;;  %v523_v58 = vlaneseq }
  0x14   :  { %1464 = vset.pattern.permute.xlu1 %v1555_v0  ;;  %1463 = vset.pattern.permute.xlu0 %v1556_v1  ;;  %v525_v4 = vld [vmem:[%s1766_s1] sm:$0xff]  ;;  %v77_v6 = vld [vmem:[#allocation2 + $0x8] sm:$0xff]  ;;  %v78_v7 = vld [vmem:[#allocation2 + $0x10] sm:$0xff]  ;;  %vm85_vm0 = vcmask 261120   ;;  %vm175_vm1 = vcmask 64512   ;;  %v1557_v43 = vmov 0.0  }
  0x15   :  { %59 = vperm.xlu1 %1464, %v31_v2   ;;  %37 = vperm.xlu0 %1463, %v31_v2   ;;  %v526_v5 = vadd.s32 4, %v525_v4  ;;  %v79_v8 = vld [vmem:[#allocation2 + $0x18] sm:$0xff]  ;;  %v1356_v9 = vpack.c.bf16 %v78_v7, %v77_v6  ;;  %v80_v10 = vld [vmem:[#allocation2 + $0x20] sm:$0xff]  ;;  %v170_v29 = vld [vmem:[#allocation2 + $0x30] sm:$0xff]  ;;  %v1558_v52 = vmov 2   ;;  %vm1559_vm2 = vmmov 0  }
  0x16   :  { %v1360_v11 = vpack.c.bf16 %v80_v10, %v79_v8  ;;  %v1126_v12 = vld [vmem:[#allocation2 + $0x1] ss:$0 sm:$0xff]  ;;  %v1124_v13 = vld [vmem:[#allocation2] ss:$0 sm:$0xff]  ;;  %v1125_v15 = vld [vmem:[#allocation2 + $0x2] ss:$0 sm:$0xff]  ;;  %1232 = vmatprep.subr.mxu1 %v170_v29 }
  0x17   :  { %1357 = vmatprep.subr.bf16.mxu0 %v1356_v9  ;;  %1233 = vmatpush3.msra.mxu1 %v170_v29  ;;  %v1127_v30 = vld [vmem:[#allocation2 + $0x28] ss:$0 sm:$0xff]  ;;  %v260_v37 = vld [vmem:[#allocation2 + $0x40] sm:$0xff]  ;;  %v262_v39 = vld [vmem:[#allocation2 + $0x50] sm:$0xff]  ;;  %v524_v59 = vand.u32 127, %v523_v58  ;;  %vm351_vm4 = vcmask 31744  }
  0x18   :  { %1359 = vmatpush3.bf16.msra.mxu0 %v1356_v9  ;;  %v261_v38 = vld [vmem:[#allocation2 + $0x48] sm:$0xff]  ;;  %v263_v41 = vld [vmem:[#allocation2 + $0x58] sm:$0xff]  ;;  %v1133_v53 = vld [vmem:[#allocation2 + $0x60] ss:$0 sm:$0xff]  ;;  %v1560_v7 = vmov 3   ;;  %s1562_s10 = smov 24  }
  0x19   :  { %63 = vperm.xlu1 %1464, %v32_v3   ;;  %42 = vperm.xlu0 %1463, %v32_v3   ;;  %v1364_v40 = vpack.c.bf16 %v261_v38, %v260_v37  ;;  %v1368_v42 = vpack.c.bf16 %v263_v41, %v262_v39  ;;  %v1130_v44 = vld [vmem:[#allocation2 + $0x38] ss:$0 sm:$0xff]  ;;  %v432_v8 = vld [vmem:[#allocation2 + $0x70] sm:$0xff]  ;;  %v626_v29 = vld [vmem:[#allocation2 + $0x100] sm:$0xff]  ;;  %vm724_vm5 = vcmask 130048   ;;  %vm726_vm6 = vcmask 195584  }
  0x1a   :  { %1361 = vmatprep.subr.bf16.mxu0 %v1360_v11  ;;  %v535_v51 = vld [vmem:[#allocation2 + $0x98] sm:$0xff]  ;;  %v630_v37 = vld [vmem:[#allocation2 + $0x120] sm:$0xff]  ;;  %vm1043_vm8 = vcmask 7168   ;;  %s1112_s27 = sshll.u32 %s1769_s4, 4  ;;  %s1113_s27 = int_to_ptr.vmem [resolvable:$true] %s1112_s27 }
  0x1b   :  { %1365 = vmatprep.subr.bf16.mxu1 %v1364_v40  ;;  %v433_v9 = vld [vmem:[#allocation2 + $0x78] sm:$0xff]  ;;  %s1536_s5 = scalar_lea.vmem %s1113_s27, 16  ;;  %p1541_p9 = scmp.lt.s32.totalorder %s1113_s27, %s1113_s27 }
  0x1c   :  { %1363 = vmatpush3.bf16.msra.mxu0 %v1360_v11  ;;  %v1670_v10 = vpack.c.bf16 %v433_v9, %v432_v8  ;;  %v435_v11 = vld [vmem:[#allocation2 + $0x88] sm:$0xff]  ;;  %p1537_p8 = scmp.ne.s32.totalorder %s1113_s27, %s1536_s5  ;;  %p1542_p10 = scmp.lt.s32.totalorder %s1536_s5, %s1536_s5 }
  0x1d   :  { %528 = vperm.xlu0 %1463, %v526_v5   ;;  %1466 = vset.pattern.permute.xlu1 %v1558_v52 }
  0x1e   :  { %1373 = vmatprep.subr.bf16.mxu0 %v1670_v10  ;;  %p1543_p11 = por %p1542_p10, %p1541_p9 }
  0x20   :  { %p1544_p12 = pnand %p1543_p11, %p1537_p8 }
  0x94   :  { %v60_v14 = vpop.permute.xlu1 %59  ;;  %v38_v16 = vpop.permute.xlu0 %37 }
  0x95   :  { %v70_v17 = vmul.f32 %v1126_v12, %v60_v14  ;;  %v49_v18 = vmul.f32 %v1124_v13, %v38_v16  ;;  %v616_v14 = vld [vmem:[#allocation2 + $0xb0] sm:$0xff]  ;;  %v1563_v16 = vmov 0.0|0.0  }
  0x97   :  { %v55_v19 = vadd.f32 %v1125_v15, %v49_v18 }
  0x98   :  { %v64_v20 = vpop.permute.xlu1 %63  ;;  %v43_v21 = vpop.permute.xlu0 %42 }
  0x99   :  { %v72_v22 = vadd.f32 %v70_v17, %v55_v19  ;;  %v50_v23 = vmul.f32 %v1124_v13, %v43_v21  ;;  %v71_v24 = vmul.f32 %v1126_v12, %v64_v20  ;;  %v615_v13 = vld [vmem:[#allocation2 + $0xa8] sm:$0xff]  ;;  %v618_v17 = vld [vmem:[#allocation2 + $0xc0] sm:$0xff]  ;;  %v620_v20 = vld [vmem:[#allocation2 + $0xd0] sm:$0xff] }
  0x9a   :  { %v619_v19 = vld [vmem:[#allocation2 + $0xc8] sm:$0xff] }
  0x9b   :  { %1476 = vtanh.f32 %v72_v22  ;;  %v56_v25 = vadd.f32 %v1125_v15, %v50_v23  ;;  %v617_v15 = vld [vmem:[#allocation2 + $0xb8] sm:$0xff]  ;;  %v1387_v21 = vpack.c.bf16 %v620_v20, %v619_v19  ;;  %v622_v23 = vld [vmem:[#allocation2 + $0xe0] sm:$0xff] }
  0x9c   :  { %v529_v60 = vpop.permute.xlu0 %528  ;;  %v1384_v18 = vpack.c.bf16 %v618_v17, %v617_v15  ;;  %v621_v22 = vld [vmem:[#allocation2 + $0xd8] sm:$0xff] }
  0x9d   :  { %v73_v26 = vadd.f32 %v71_v24, %v56_v25  ;;  %vm530_vm3 = vcmp.eq.s32.totalorder %v524_v59, %v529_v60  ;;  %v1390_v24 = vpack.c.bf16 %v622_v23, %v621_v22  ;;  %v623_v25 = vld [vmem:[#allocation2 + $0xe8] sm:$0xff]  ;;  %v731_v22 = vld [vmem:[#allocation2 + $0x138] sm:$0xff]  ;;  %v732_v23 = vld [vmem:[#allocation2 + $0x140] sm:$0xff] }
  0x9e   :  { %v1144_v63 = vsel %vm530_vm3, 1.0, %v1557_v43 }
  0x9f   :  { %1478 = vtanh.f32 %v73_v26  ;;  %v624_v26 = vld [vmem:[#allocation2 + $0xf0] sm:$0xff] }
  0xa5   :  { %v1477_v27 = vpop.eup %1476 }
  0xa6   :  { %1229 = vmatprep.mubr.msk.f32.mxu0 %vm85_vm0, %v1477_v27  ;;  %v1393_v27 = vpack.c.bf16 %v624_v26, %v623_v25  ;;  %v733_v25 = vld [vmem:[#allocation2 + $0x148] sm:$0xff] }
  0xa7   :  { %v1408_v26 = vpack.c.bf16 %v733_v25, %v732_v23  ;;  %v1152_v23 = vld [vmem:[#allocation2 + $0x1d8] ss:$0 sm:$0xff] }
  0xa9   :  { %v1479_v28 = vpop.eup %1478 }
  0xaa   :  { %1230 = vmatmul.mubr.msk.f32.vlgmr.msra.gmra.mrb[0].mxu0 %vm85_vm0, %v1479_v28  ;;  %v625_v28 = vld [vmem:[#allocation2 + $0xf8] sm:$0xff] }
  0xab   :  { %1375 = vmatpush3.bf16.msra.mxu0 %v1670_v10 }
 0x17d   :  { %v1231_v31 = vpop.f32.mrb[0].mxu0 }
 0x17e   :  { %v164_v32 = vadd.f32 %v1231_v31, %v1127_v30  ;;  %v158_v33 = vpop.f32.mrb[1].mxu0  ;;  %v627_v31 = vld [vmem:[#allocation2 + $0x108] sm:$0xff] }
 0x17f   :  { %v159_v34 = vadd.f32 %v1127_v30, %v158_v33  ;;  %v1396_v30 = vpack.c.bf16 %v626_v29, %v625_v28  ;;  %v1147_v28 = vld [vmem:[#allocation2 + $0x128] ss:$0 sm:$0xff] }
 0x181   :  { %1480 = vtanh.f32 %v159_v34  ;;  %v629_v34 = vld [vmem:[#allocation2 + $0x118] sm:$0xff] }
 0x182   :  { %1482 = vtanh.f32 %v164_v32  ;;  %v628_v32 = vld [vmem:[#allocation2 + $0x110] sm:$0xff]  ;;  %v1402_v38 = vpack.c.bf16 %v630_v37, %v629_v34 }
 0x183   :  { %v1399_v33 = vpack.c.bf16 %v628_v32, %v627_v31 }
 0x18b   :  { %v1616_v35 = vpop.eup %1480 }
 0x18c   :  { %v1618_v36 = vpop.eup %1482  ;;  %1234 = vmatprep.mubr.msk.f32.mxu1 %vm175_vm1, %v1616_v35 }
 0x18d   :  { %1235 = vmatmul.mubr.msk.f32.vlgmr.msra.gmra.mrb[0].mxu1 %vm175_vm1, %v1618_v36 }
 0x18e   :  { %1367 = vmatpush3.bf16.msra.mxu1 %v1364_v40 }
 0x18f   :  { %1369 = vmatprep.subr.bf16.mxu1 %v1368_v42 }
 0x192   :  { %1371 = vmatpush3.bf16.msra.mxu1 %v1368_v42  ;;  %v1690_v42 = vld [vmem:[#allocation2 + $0x68] ss:$0 sm:$0xff] }
 0x193   :  { %1259 = vmatprep.subr.mxu1 %v1557_v43 }
 0x260   :  { %v1236_v45 = vpop.f32.mrb[0].mxu1 }
 0x261   :  { %v254_v46 = vadd.f32 %v1236_v45, %v1130_v44  ;;  %v248_v47 = vpop.f32.mrb[1].mxu1 }
 0x262   :  { %v249_v48 = vadd.f32 %v1130_v44, %v248_v47 }
 0x264   :  { %1484 = vtanh.f32 %v249_v48 }
 0x265   :  { %1486 = vtanh.f32 %v254_v46  ;;  %v1693_v46 = vld [vmem:[#allocation2 + $0x69] ss:$0 sm:$0xff] }
 0x26e   :  { %v1485_v49 = vpop.eup %1484 }
 0x26f   :  { %v1487_v50 = vpop.eup %1486  ;;  %1245 = vmatprep.mubr.msk.f32.mxu1 %vm85_vm0, %v1485_v49  ;;  %v1696_v49 = vld [vmem:[#allocation2 + $0x6c] ss:$0 sm:$0xff] }
 0x270   :  { %1246 = vmatmul.mubr.msk.f32.vlgmr.msra.gmra.mrb[2].mxu1 %vm85_vm0, %v1487_v50 }
 0x271   :  { %1260 = vmatpush3.msra.mxu1 %v535_v51  ;;  %1261 = vmatprep.mubr.msk.f32.mxu1 %vm1559_vm2, %v1557_v43 }
 0x272   :  { %1380 = vmatprep.subr.bf16.mxu1 %v1563_v16 }
 0x343   :  { %v1247_v54 = vpop.f32.mrb[2].mxu1 }
 0x344   :  { %v346_v55 = vadd.f32 %v1247_v54, %v1133_v53  ;;  %v340_v56 = vpop.f32.mrb[3].mxu1  ;;  %v1701_v54 = vld [vmem:[#allocation2 + $0x6a] ss:$0 sm:$0xff] }
 0x345   :  { %v341_v57 = vadd.f32 %v1133_v53, %v340_v56  ;;  %v1704_v56 = vld [vmem:[#allocation2 + $0x6b] ss:$0 sm:$0xff] }
 0x346   :  { %1488 = vtanh.f32 %v346_v55 }
 0x347   :  { %1490 = vtanh.f32 %v341_v57 }
 0x350   :  { %v1489_v61 = vpop.eup %1488 }
 0x351   :  { %v1630_v62 = vpop.eup %1490  ;;  %401 = vperm.xlu1 %1466, %v1489_v61   ;;  %363 = vperm.xlu0 %1463, %v1489_v61   ;;  %353 = vst.msk [vmem:[%s1768_s3 + $0x8] sm:$0xff] %vm351_vm4, %v1489_v61 }
 0x352   :  { %v1638_v2 = vadd.f32 %v1630_v62, %v1144_v63  ;;  %352 = vst.msk [vmem:[%s1768_s3] sm:$0xff] %vm351_vm4, %v1630_v62  ;;  %v1032_v3 = vsub.f32 %v1489_v61, %v1630_v62  ;;  %s1561_s3 = smov 16  }
 0x354   :  { %1262 = vmatmul.mubr.msk.f32.vlgmr.msra.gmra.mrb[4].mxu1 %vm175_vm1, %v1638_v2  ;;  %v1033_v4 = vand.u32 2147483647, %v1032_v3 }
 0x355   :  { %1467 = vset.pattern.permute.xlu1 %v1556_v1  ;;  %1465 = vset.pattern.permute.xlu0 %v1555_v0 }
 0x356   :  { %384 = vperm.xlu0 %1465, %v1489_v61   ;;  %358 = vperm.xlu1 %1467, %v1630_v62   ;;  %v1652_v5 = vsel %vm351_vm4, %v1033_v4, 0.0  ;;  %v1655_v6 = vsel %vm351_vm4, %v1033_v4, -inf }
 0x357   :  { %1296 = vmatprep.mubr.msk.f32.mxu1 %vm1559_vm2, %v1557_v43 }
 0x35a   :  { %1470 = vset.pattern.permute.xlu0 %v1560_v7  ;;  %1468 = vset.pattern.permute.xlu1 %v1555_v0 }
 0x35b   :  { %414 = vperm.xlu0 %1470, %v1630_v62   ;;  %380 = vperm.xlu1 %1468, %v1630_v62  }
 0x35f   :  { %1469 = vset.pattern.permute.xlu1 %v1558_v52  ;;  %717 = vrot.lane.b32.xlu0 %v1638_v2, %s1561_s3 }
 0x360   :  { %397 = vperm.xlu1 %1469, %v1630_v62   ;;  %1472 = vset.pattern.permute.xlu0 %v1556_v1  ;;  %v434_v1 = vld [vmem:[#allocation2 + $0x80] sm:$0xff] }
 0x361   :  { %v1676_v12 = vpack.c.bf16 %v435_v11, %v434_v1 }
 0x363   :  { %1377 = vmatprep.subr.bf16.mxu0 %v1676_v12 }
 0x364   :  { %1471 = vset.pattern.permute.xlu1 %v1560_v7  ;;  %1379 = vmatpush3.bf16.msra.mxu0 %v1676_v12 }
 0x365   :  { %418 = vperm.xlu1 %1471, %v1489_v61   ;;  %1404 = vmatprep.subr.bf16.mxu0 %v1563_v16 }
 0x369   :  { %714 = vrot.lane.b32.xlu1 %v1638_v2, %s1554_s26 }
 0x36a   :  { %1473 = vset.pattern.permute.xlu1 %v1555_v0  ;;  %v1381_v0 = vpack.c.bf16 %v616_v14, %v615_v13 }
 0x36c   :  { %1382 = vmatpush3.bf16.msra.mxu1 %v1381_v0  ;;  %v1145_v0 = vld [vmem:[#allocation2 + $0xa0] ss:$0 sm:$0xff] }
 0x36d   :  { %720 = vrot.lane.b32.xlu1 %v1638_v2, %s1562_s10  ;;  %1383 = vmatprep.subr.bf16.mxu1 %v1563_v16 }
 0x370   :  { %1385 = vmatpush3.bf16.msra.mxu1 %v1384_v18 }
 0x371   :  { %1386 = vmatprep.subr.bf16.mxu1 %v1563_v16 }
 0x374   :  { %1388 = vmatpush3.bf16.msra.mxu1 %v1387_v21  ;;  %v730_v21 = vld [vmem:[#allocation2 + $0x130] sm:$0xff] }
 0x375   :  { %1389 = vmatprep.subr.bf16.mxu1 %v1563_v16 }
 0x378   :  { %1391 = vmatpush3.bf16.msra.mxu1 %v1390_v24  ;;  %v1405_v24 = vpack.c.bf16 %v731_v22, %v730_v21 }
 0x379   :  { %1392 = vmatprep.subr.bf16.mxu1 %v1563_v16 }
 0x37c   :  { %1394 = vmatpush3.bf16.msra.mxu1 %v1393_v27 }
 0x37d   :  { %1395 = vmatprep.subr.bf16.mxu1 %v1563_v16 }
 0x380   :  { %1397 = vmatpush3.bf16.msra.mxu1 %v1396_v30 }
 0x381   :  { %1398 = vmatprep.subr.bf16.mxu1 %v1563_v16 }
 0x384   :  { %1400 = vmatpush3.bf16.msra.mxu1 %v1399_v33 }
 0x385   :  { %1401 = vmatprep.subr.bf16.mxu1 %v1563_v16 }
 0x388   :  { %1403 = vmatpush3.bf16.msra.mxu1 %v1402_v38 }
 0x389   :  { %1434 = vmatprep.subr.bf16.mxu1 %v1563_v16 }
 0x3d0   :  { %v402_v39 = vpop.permute.xlu1 %401  ;;  %v364_v40 = vpop.permute.xlu0 %363 }
 0x3d1   :  { %v371_v48 = vmul.f32 %v1690_v42, %v364_v40  ;;  %v409_v4 = vmul.f32 %v1701_v54, %v402_v39  ;;  %v813_v39 = vld [vmem:[#allocation2 + $0x158] sm:$0xff]  ;;  %v814_v40 = vld [vmem:[#allocation2 + $0x160] sm:$0xff] }
 0x3d3   :  { %v377_v55 = vadd.f32 %v1696_v49, %v371_v48 }
 0x3d5   :  { %v359_v41 = vpop.permute.xlu1 %358  ;;  %v385_v44 = vpop.permute.xlu0 %384 }
 0x3d6   :  { %v370_v45 = vmul.f32 %v1690_v42, %v359_v41  ;;  %v392_v51 = vmul.f32 %v1693_v46, %v385_v44 }
 0x3d8   :  { %v376_v53 = vadd.f32 %v1696_v49, %v370_v45  ;;  %v394_v61 = vadd.f32 %v392_v51, %v377_v55  ;;  %v816_v55 = vld [vmem:[#allocation2 + $0x170] sm:$0xff] }
 0x3da   :  { %v381_v47 = vpop.permute.xlu1 %380  ;;  %v415_v57 = vpop.permute.xlu0 %414  ;;  %v411_v1 = vadd.f32 %v409_v4, %v394_v61  ;;  %v820_v61 = vld [vmem:[#allocation2 + $0x190] sm:$0xff]  ;;  %v822_v4 = vld [vmem:[#allocation2 + $0x1a0] sm:$0xff] }
 0x3db   :  { %v391_v50 = vmul.f32 %v1693_v46, %v381_v47  ;;  %v425_v63 = vmul.f32 %v1704_v56, %v415_v57  ;;  %v817_v57 = vld [vmem:[#allocation2 + $0x178] sm:$0xff] }
 0x3dd   :  { %v393_v59 = vadd.f32 %v391_v50, %v376_v53  ;;  %v1411_v50 = vpack.c.bf16 %v814_v40, %v813_v39  ;;  %v815_v53 = vld [vmem:[#allocation2 + $0x168] sm:$0xff] }
 0x3de   :  { %v718_v44 = vpop.permute.xlu0 %717 }
 0x3df   :  { %v398_v58 = vpop.permute.xlu1 %397 }
 0x3e0   :  { %v408_v60 = vmul.f32 %v1701_v54, %v398_v58  ;;  %v818_v58 = vld [vmem:[#allocation2 + $0x180] sm:$0xff] }
 0x3e2   :  { %v410_v3 = vadd.f32 %v408_v60, %v393_v59  ;;  %v1417_v59 = vpack.c.bf16 %v818_v58, %v817_v57  ;;  %v819_v60 = vld [vmem:[#allocation2 + $0x188] sm:$0xff] }
 0x3e4   :  { %v427_v8 = vadd.f32 %v425_v63, %v410_v3  ;;  %v419_v9 = vpop.permute.xlu1 %418  ;;  %v1420_v63 = vpack.c.bf16 %v820_v61, %v819_v60  ;;  %v821_v3 = vld [vmem:[#allocation2 + $0x198] sm:$0xff] }
 0x3e5   :  { %v426_v11 = vmul.f32 %v1704_v56, %v419_v9  ;;  %v824_v9 = vld [vmem:[#allocation2 + $0x1b0] sm:$0xff] }
 0x3e6   :  { %1492 = vtanh.f32 %v427_v8  ;;  %v1423_v8 = vpack.c.bf16 %v822_v4, %v821_v3 }
 0x3e7   :  { %v428_v13 = vadd.f32 %v426_v11, %v411_v1  ;;  %v825_v11 = vld [vmem:[#allocation2 + $0x1b8] sm:$0xff] }
 0x3e8   :  { %v715_v34 = vpop.permute.xlu1 %714 }
 0x3e9   :  { %1494 = vtanh.f32 %v428_v13  ;;  %v723_v37 = vsel %vm175_vm1, %v1638_v2, %v715_v34  ;;  %v1414_v2 = vpack.c.bf16 %v816_v55, %v815_v53  ;;  %v826_v13 = vld [vmem:[#allocation2 + $0x1c0] sm:$0xff] }
 0x3ea   :  { %v725_v45 = vsel %vm724_vm5, %v723_v37, %v718_v44 }
 0x3ec   :  { %v721_v38 = vpop.permute.xlu1 %720 }
 0x3ed   :  { %v727_v47 = vsel %vm726_vm6, %v725_v45, %v721_v38 }
 0x3f0   :  { %v1493_v14 = vpop.eup %1492 }
 0x3f1   :  { %1256 = vmatprep.mubr.msk.f32.mxu0 %vm85_vm0, %v1493_v14  ;;  %v1429_v14 = vpack.c.bf16 %v826_v13, %v825_v11 }
 0x3f3   :  { %v1495_v15 = vpop.eup %1494 }
 0x3f4   :  { %1257 = vmatmul.mubr.msk.f32.vlgmr.msra.gmra.mrb[2].mxu0 %vm85_vm0, %v1495_v15  ;;  %v827_v15 = vld [vmem:[#allocation2 + $0x1c8] sm:$0xff] }
 0x3f5   :  { %1307 = vmatprep.mubr.msk.f32.mxu0 %vm1559_vm2, %v1557_v43  ;;  %1406 = vmatpush3.bf16.msra.mxu0 %v1405_v24 }
 0x3f6   :  { %1407 = vmatprep.subr.bf16.mxu0 %v1563_v16 }
 0x3f9   :  { %1409 = vmatpush3.bf16.msra.mxu0 %v1408_v26 }
 0x3fa   :  { %1410 = vmatprep.subr.bf16.mxu0 %v1563_v16 }
 0x427   :  { %v609_v17 = vpop.f32.mrb[4].mxu1 }
 0x428   :  { %v610_v18 = vadd.f32 %v1145_v0, %v609_v17  ;;  %v1263_v19 = vpop.f32.mrb[5].mxu1  ;;  %v828_v0 = vld [vmem:[#allocation2 + $0x1d0] sm:$0xff] }
 0x429   :  { %v1432_v17 = vpack.c.bf16 %v828_v0, %v827_v15 }
 0x42a   :  { %1496 = vtanh.f32 %v610_v18  ;;  %v1150_v18 = vld [vmem:[#allocation2 + $0x150] ss:$0 sm:$0xff] }
 0x434   :  { %v1497_v20 = vpop.eup %1496 }
 0x435   :  { %1297 = vmatmul.mubr.f32.vlgmr.msra.gmra.mrb[6].mxu1 %v1497_v20 }
 0x436   :  { %1436 = vmatpush3.bf16.msra.mxu1 %v1670_v10  ;;  %1353 = vmatprep.mubr.msk.f32.mxu1 %vm1559_vm2, %v1557_v43 }
 0x437   :  { %1437 = vmatprep.subr.bf16.mxu1 %v1563_v16 }
 0x43a   :  { %1439 = vmatpush3.bf16.msra.mxu1 %v1676_v12 }
 0x4c7   :  { %v1721_v10 = vpop.f32.mrb[2].mxu0 }
 0x4c8   :  { %v1723_v27 = vpop.f32.mrb[3].mxu0 }
 0x508   :  { %v701_v29 = vpop.f32.mrb[6].mxu1 }
 0x509   :  { %v702_v30 = vadd.f32 %v1147_v28, %v701_v29  ;;  %v1298_v12 = vpop.f32.mrb[7].mxu1 }
 0x50b   :  { %v1148_v31 = vmul.f32 -1.442695, %v702_v30 }
 0x50d   :  { %1498 = vpow2.f32 %v1148_v31 }
 0x517   :  { %v1499_v32 = vpop.eup %1498 }
 0x518   :  { %v708_v33 = vadd.f32 1.0, %v1499_v32 }
 0x51a   :  { %1500 = vrcp.f32 %v708_v33 }
 0x524   :  { %v1727_v41 = vpop.eup %1500 }
 0x525   :  { %vm711_vm7 = vcmp.gt.f32.partialorder %v1727_v41, 0.5 }
 0x526   :  { %v1149_v48 = vsel %vm711_vm7, 1.0, %v1557_v43 }
 0x527   :  { %v728_v51 = vmul.f32 %v1149_v48, %v727_v47 }
 0x529   :  { %1308 = vmatmul.mubr.msk.f32.vlgmr.msra.gmra.mrb[4].mxu0 %vm85_vm0, %v728_v51 }
 0x52a   :  { %1412 = vmatpush3.bf16.msra.mxu0 %v1411_v50  ;;  %1342 = vmatprep.mubr.msk.f32.mxu0 %vm1559_vm2, %v1557_v43  ;;  %v823_v43 = vld [vmem:[#allocation2 + $0x1a8] sm:$0xff] }
 0x52b   :  { %1413 = vmatprep.subr.bf16.mxu0 %v1563_v16  ;;  %v1426_v1 = vpack.c.bf16 %v824_v9, %v823_v43 }
 0x52e   :  { %1415 = vmatpush3.bf16.msra.mxu0 %v1414_v2 }
 0x52f   :  { %1416 = vmatprep.subr.bf16.mxu0 %v1563_v16 }
 0x532   :  { %1418 = vmatpush3.bf16.msra.mxu0 %v1417_v59 }
 0x533   :  { %1419 = vmatprep.subr.bf16.mxu0 %v1563_v16 }
 0x536   :  { %1421 = vmatpush3.bf16.msra.mxu0 %v1420_v63 }
 0x537   :  { %1422 = vmatprep.subr.bf16.mxu0 %v1563_v16 }
 0x53a   :  { %1424 = vmatpush3.bf16.msra.mxu0 %v1423_v8 }
 0x53b   :  { %1425 = vmatprep.subr.bf16.mxu0 %v1563_v16 }
 0x53e   :  { %1427 = vmatpush3.bf16.msra.mxu0 %v1426_v1 }
 0x53f   :  { %1428 = vmatprep.subr.bf16.mxu0 %v1563_v16 }
 0x542   :  { %1430 = vmatpush3.bf16.msra.mxu0 %v1429_v14 }
 0x543   :  { %1431 = vmatprep.subr.bf16.mxu0 %v1563_v16  ;;  %v1141_v16 = vld [vmem:[#allocation2 + $0x90] ss:$0 sm:$0xff] }
 0x544   :  { %v513_v29 = vadd.f32 %v1141_v16, %v1723_v27  ;;  %v518_v48 = vadd.f32 %v1721_v10, %v1141_v16 }
 0x546   :  { %1433 = vmatpush3.bf16.msra.mxu0 %v1432_v17 }
 0x5fc   :  { %v807_v19 = vpop.f32.mrb[4].mxu0 }
 0x5fd   :  { %v808_v20 = vadd.f32 %v1150_v18, %v807_v19  ;;  %v1309_v21 = vpop.f32.mrb[5].mxu0 }
 0x5ff   :  { %1502 = vtanh.f32 %v808_v20 }
 0x600   :  { %1504 = vtanh.f32 %v513_v29 }
 0x609   :  { %v1503_v22 = vpop.eup %1502 }
 0x60a   :  { %1343 = vmatmul.mubr.f32.vlgmr.msra.gmra.mrb[6].mxu0 %v1503_v22  ;;  %v1505_v30 = vpop.eup %1504 }
 0x60b   :  { %v1057_v12 = vsub.f32 %v1616_v35, %v1505_v30 }
 0x60d   :  { %v1058_v31 = vmul.f32 %v1057_v12, %v1057_v12 }
 0x6dd   :  { %v899_v24 = vpop.f32.mrb[6].mxu0 }
 0x6de   :  { %v900_v25 = vadd.f32 %v1152_v23, %v899_v24  ;;  %v1344_v26 = vpop.f32.mrb[7].mxu0 }
 0x6e0   :  { %v903_v28 = vadd.f32 %v1630_v62, %v900_v25  ;;  %v1019_v62 = vsel %vm85_vm0, %v1727_v41, 0.0 }
 0x6e2   :  { %912 = vperm.xlu1 %1473, %v903_v28   ;;  %906 = vperm.xlu0 %1472, %v903_v28  }
 0x6e6   :  { %1474 = vset.pattern.permute.xlu1 %v1558_v52  ;;  %1475 = vset.pattern.permute.xlu0 %v1560_v7  ;;  %v1059_v52 = vsel %vm175_vm1, %v1058_v31, 0.0 }
 0x6e7   :  { %918 = vperm.xlu1 %1474, %v903_v28   ;;  %924 = vperm.xlu0 %1475, %v903_v28  }
 0x706   :  { %1035 = vadd.xlane.f32.xlu0 %v1652_v5 }
 0x70a   :  { %1020 = vadd.xlane.f32.xlu0 %v1019_v62 }
 0x70b   :  { %1038 = vmax.xlane.f32.xlu1 %v1655_v6 }
 0x70e   :  { %1060 = vadd.xlane.f32.xlu0 %v1059_v52 }
 0x761   :  { %v913_v7 = vpop.permute.xlu1 %912  ;;  %v907_v32 = vpop.permute.xlu0 %906 }
 0x762   :  { %v909_v27 = vmul.f32 %v1690_v42, %v907_v32  ;;  %v915_v33 = vmul.f32 %v1693_v46, %v913_v7 }
 0x764   :  { %v910_v35 = vadd.f32 %v1696_v49, %v909_v27 }
 0x766   :  { %v919_v34 = vpop.permute.xlu1 %918  ;;  %v916_v5 = vadd.f32 %v915_v33, %v910_v35  ;;  %v925_v37 = vpop.permute.xlu0 %924 }
 0x767   :  { %v921_v38 = vmul.f32 %v1701_v54, %v919_v34  ;;  %v927_v40 = vmul.f32 %v1704_v56, %v925_v37 }
 0x769   :  { %v922_v39 = vadd.f32 %v921_v38, %v916_v5 }
 0x76b   :  { %v928_v6 = vadd.f32 %v927_v40, %v922_v39 }
 0x76d   :  { %1506 = vtanh.f32 %v928_v6 }
 0x777   :  { %v1507_v41 = vpop.eup %1506 }
 0x778   :  { %1354 = vmatmul.mubr.msk.f32.vlgmr.msra.gmra.mrb[8].mxu1 %vm85_vm0, %v1507_v41 }
 0x793   :  { %v1036_v46 = vpop.xlane.xlu0 %1035 }
 0x797   :  { %v1021_v10 = vpop.xlane.xlu0 %1020 }
 0x798   :  { %v1039_v44 = vpop.xlane.xlu1 %1038  ;;  %v1022_v3 = vrot.slane %v1021_v10, 4 }
 0x799   :  { %v1040_v45 = vadd.f32 1e-06, %v1039_v44 }
 0x79a   :  { %v1023_v43 = vadd.f32 %v1022_v3, %v1021_v10 }
 0x79b   :  { %1508 = vrcp.f32 %v1040_v45  ;;  %v1061_v63 = vpop.xlane.xlu0 %1060 }
 0x79c   :  { %1510 = vtanh.f32 %v518_v48  ;;  %v1062_v8 = vrot.slane %v1061_v63, 4  ;;  %v1024_v11 = vrot.slane %v1023_v43, 2 }
 0x79e   :  { %v1063_v1 = vadd.f32 %v1062_v8, %v1061_v63  ;;  %v1025_v18 = vadd.f32 %v1024_v11, %v1023_v43 }
 0x7a0   :  { %v1064_v15 = vrot.slane %v1063_v1, 2  ;;  %v1026_v25 = vrot.slane %v1025_v18, 1 }
 0x7a2   :  { %v1065_v22 = vadd.f32 %v1064_v15, %v1063_v1  ;;  %v1027_v62 = vadd.f32 %v1026_v25, %v1025_v18 }
 0x7a4   :  { %v1066_v29 = vrot.slane %v1065_v22, 1 }
 0x7a5   :  { %v1509_v42 = vpop.eup %1508 }
 0x7a6   :  { %v1042_v49 = vmul.f32 %v1509_v42, %v1036_v46  ;;  %v1511_v51 = vpop.eup %1510  ;;  %v1067_v7 = vadd.f32 %v1066_v29, %v1065_v22 }
 0x7a7   :  { %v1072_v2 = vsub.f32 %v1618_v36, %v1511_v51 }
 0x7a8   :  { %v1044_v47 = vsel %vm1043_vm8, %v1042_v49, 0.0 }
 0x7a9   :  { %1045 = vadd.xlane.f32.xlu1 %v1044_v47  ;;  %v1073_v59 = vmul.f32 %v1072_v2, %v1072_v2 }
 0x7ab   :  { %v1074_v60 = vsel %vm175_vm1, %v1073_v59, 0.0 }
 0x836   :  { %v1046_v61 = vpop.xlane.xlu1 %1045 }
 0x837   :  { %v1047_v4 = vrot.slane %v1046_v61, 4 }
 0x839   :  { %v1048_v9 = vadd.f32 %v1047_v4, %v1046_v61 }
 0x84b   :  { %v999_v54 = vpop.f32.mrb[8].mxu1 }
 0x84c   :  { %v1000_v50 = vadd.f32 %v1141_v16, %v999_v54  ;;  %v1355_v56 = vpop.f32.mrb[9].mxu1 }
 0x84e   :  { %1512 = vtanh.f32 %v1000_v50 }
 0x858   :  { %v1513_v53 = vpop.eup %1512 }
 0x859   :  { %v1004_v55 = vsub.f32 %v1618_v36, %v1513_v53  ;;  %v1049_v36 = vrot.slane %v1048_v9, 2 }
 0x85b   :  { %v1005_v57 = vmul.f32 %v1004_v55, %v1004_v55  ;;  %v1050_v21 = vadd.f32 %v1049_v36, %v1048_v9 }
 0x85d   :  { %v1006_v58 = vsel %vm175_vm1, %v1005_v57, 0.0  ;;  %v1051_v16 = vrot.slane %v1050_v21, 1 }
 0x85e   :  { %1007 = vadd.xlane.f32.xlu1 %v1006_v58 }
 0x85f   :  { %v1052_v31 = vadd.f32 %v1051_v16, %v1050_v21 }
 0x862   :  { %1075 = vadd.xlane.f32.xlu1 %v1074_v60 }
 0x8eb   :  { %v1008_v13 = vpop.xlane.xlu1 %1007 }
 0x8ec   :  { %v1009_v14 = vrot.slane %v1008_v13, 4 }
 0x8ee   :  { %v1010_v0 = vadd.f32 %v1009_v14, %v1008_v13 }
 0x8ef   :  { %v1076_v17 = vpop.xlane.xlu1 %1075 }
 0x8f0   :  { %v1011_v19 = vrot.slane %v1010_v0, 2  ;;  %v1077_v20 = vrot.slane %v1076_v17, 4 }
 0x8f2   :  { %v1078_v23 = vadd.f32 %v1077_v20, %v1076_v17  ;;  %v1012_v24 = vadd.f32 %v1011_v19, %v1010_v0 }
 0x8f4   :  { %v1079_v26 = vrot.slane %v1078_v23, 2  ;;  %v1013_v28 = vrot.slane %v1012_v24, 1 }
 0x8f6   :  { %v1080_v30 = vadd.f32 %v1079_v26, %v1078_v23  ;;  %v1014_v12 = vadd.f32 %v1013_v28, %v1012_v24 }
 0x8f8   :  { %1440 = vpush %v1014_v12  ;;  %v1081_v52 = vrot.slane %v1080_v30, 1 }
 0x8f9   :  { %1442 = vpush %v1027_v62 }
 0x8fa   :  { %1444 = vpush %v1052_v31  ;;  %v1082_v32 = vadd.f32 %v1081_v52, %v1080_v30 }
 0x8fb   :  { %1446 = vpush %v1067_v7 }
 0x8fc   :  { %1448 = vpush %v1082_v32 }
 0x929   :  { %s1441_s11 = spop %1440 }
 0x92a   :  { %s1018_s12 = smul.f32 0.015625, %s1441_s11  ;;  %s1443_s13 = spop %1442 }
 0x92b   :  { %s1031_s14 = smul.f32 0.00390625, %s1443_s13  ;;  %s1445_s15 = spop %1444 }
 0x92c   :  { %1099 = sst [smem:[#allocation5 + $0x2]] %s1018_s12  ;;  %s1056_s16 = smul.f32 0.125, %s1445_s15 }
 0x92d   :  { %s1089_s17 = smul.f32 0.003, %s1031_s14  ;;  %1095 = sst [smem:[#allocation5]] %s1031_s14 }
 0x92e   :  { %s1090_s18 = smul.f32 0.003, %s1056_s16  ;;  %1097 = sst [smem:[#allocation5 + $0x1]] %s1056_s16 }
 0x92f   :  { %s1447_s19 = spop %1446 }
 0x930   :  { %s1071_s20 = smul.f32 0.015625, %s1447_s19  ;;  %s1449_s21 = spop %1448 }
 0x931   :  { %s1091_s22 = sadd.f32 %s1090_s18, %s1089_s17  ;;  %s1086_s23 = smul.f32 0.015625, %s1449_s21 }
 0x933   :  { %s1087_s24 = sadd.f32 %s1086_s23, %s1071_s20 }
 0x934   :  { %s1092_s29 = sadd.f32 %s1091_s22, %s1018_s12 }
 0x935   :  { %s1088_s28 = smul.f32 0.5, %s1087_s24 }
 0x937   :  { %s1093_s30 = sadd.f32 %s1092_s29, %s1088_s28 }
 0x938   :  { %1101 = sst [smem:[#allocation5 + $0x3]] %s1088_s28 }
 0x939   :  { %1103 = sst [smem:[#allocation5 + $0x4]] %s1093_s30 }
 0x93a   :  { %1547 = shalt.err (!%p1544_p12)
}
 0x93b   :  { %s1564_s6 = smov [#allocation5]  }
 0x93c   :  { %1115 = dma.smem_to_vmem %s1564_s6, 16, %s1113_s27, [#allocation4]  }
 0x93d   :  { %1550 = dma.done.wait [#allocation4], 16  }
 0x93e   :  { %1551 = vsyncadd [#allocation4], 4294967280 }
 0x93f   :  { %1121 = sfence }
 0x940   :  { %1122 = vsyncpa [#allocation3], 1 }
 0x941   :  { %1123 = vsyncpa [#allocation4], 1 }

</bundles_post_ra>
